<compile_context>
chip_gen: v5e
topology: v5e:2x2
jax: 0.10.0
libtpu: 0.0.40
codegen_flags: <defaults>
</compile_context>

<pallas_src>
import functools

import numpy as np
import jax
import jax.numpy as jnp
from jax import lax
from jax.experimental import pallas as pl
from jax.experimental.pallas import tpu as pltpu


# ----------------------------------------------------------------------------
# Fused Pallas kernel: encoders -> normalize -> cosine triplet loss -> mean
# ----------------------------------------------------------------------------
def _fused_triplet_kernel(x_ref, img_w_ref, img_b_ref,
                          plat_ref, plon_ref, nlat_ref, nlon_ref,
                          loc_w_ref, loc_b_ref,
                          o_ref, *, valid_b):
    # ---- synthetic image_encoder: (B_pad, K) @ (K, D) + b  (bf16 MXU) ----
    # TODO(synk): at real GeoCLIP scale (K = 3*224*224) this matmul must be
    # K-tiled (grid axis "arbitrary", f32 VMEM accumulator, pl.when init /
    # finalize epilogue; tk sized for v7x's 64 MiB VMEM, vmem_limit_bytes
    # raised on v6e/v5e). At K=768 the whole block fits in one program.
    anchors = (
        jnp.dot(x_ref[...], img_w_ref[...], preferred_element_type=jnp.float32)
        + img_b_ref[...]
    )

    # ---- synthetic location_encoder: K=2 contraction on the VPU ----
    # lat/lon arrive pre-split as (B_pad, 1) columns -> broadcast FMA,
    # no MXU round trip and no in-kernel lane selects.
    lw = loc_w_ref[...]                               # (2, D) f32
    w0 = lw[0:1, :]                                   # (1, D)
    w1 = lw[1:2, :]                                   # (1, D)
    lb = loc_b_ref[...]                               # (1, D)

    positives = plat_ref[...] * w0 + plon_ref[...] * w1 + lb   # (B_pad, D)
    negatives = nlat_ref[...] * w0 + nlon_ref[...] * w1 + lb   # (B_pad, D)

    # ---- F.normalize(dim=1, eps=1e-12) via rsqrt (EUP) ----
    def l2_normalize(x):
        s = jnp.sum(x * x, axis=1, keepdims=True)
        # x / max(sqrt(s), 1e-12)  ==  x * rsqrt(max(s, 1e-24))
        return x * lax.rsqrt(jnp.maximum(s, 1e-24))

    a = l2_normalize(anchors)
    p = l2_normalize(positives)
    n = l2_normalize(negatives)

    # ---- cosine triplet hinge ----
    # After normalization cos(x, y) == sum(x*y); the CosineSimilarity 1e-8
    # denominator clamp never binds, so it is dropped.
    cos_ap = jnp.sum(a * p, axis=1, keepdims=True)    # (B_pad, 1)
    cos_an = jnp.sum(a * n, axis=1, keepdims=True)    # (B_pad, 1)
    # (1 - cos_ap) - (1 - cos_an) + margin(=1.0)
    per_sample = jnp.maximum(cos_an - cos_ap + 1.0, 0.0)

    # ---- masked mean over the true batch (padded rows hinge to 1.0) ----
    row_ids = lax.broadcasted_iota(jnp.int32, per_sample.shape, 0)
    masked = jnp.where(row_ids < valid_b, per_sample, 0.0)
    o_ref[...] = jnp.sum(masked, axis=(0, 1), keepdims=True) / float(valid_b)


def pallas_triplet_loss(x_flat, img_w, img_b,
                        plat, plon, nlat, nlon,
                        loc_w, loc_b, *, valid_b):
    """Single fused pallas_call returning the scalar triplet loss."""
    B_pad, K = x_flat.shape
    D = img_w.shape[1]

    vmem = pl.BlockSpec(memory_space=pltpu.MemorySpace.VMEM)
    cost = pl.CostEstimate(
        flops=2 * B_pad * K * D            # image-encoder matmul
              + 14 * B_pad * D,            # loc FMAs + normalize + hinge (approx)
        transcendentals=3 * B_pad,         # rsqrt per row per branch
        bytes_accessed=(B_pad * K * 2      # x bf16
                        + K * D * 2        # img_w bf16
                        + 2 * D * 4        # img_b + loc_b
                        + 2 * D * 4        # loc_w
                        + 4 * B_pad * 4    # lat/lon columns
                        + 4),              # scalar out
    )

    loss = pl.pallas_call(
        functools.partial(_fused_triplet_kernel, valid_b=valid_b),
        out_shape=jax.ShapeDtypeStruct((1, 1), jnp.float32),
        in_specs=[vmem] * 9,
        out_specs=vmem,
        cost_estimate=cost,
    )(x_flat, img_w, img_b, plat, plon, nlat, nlon, loc_w, loc_b)
    return loss[0, 0]


# ----------------------------------------------------------------------------
# Host-side glue: hard-negative mining (numpy, fixed seed)
# ----------------------------------------------------------------------------
def _haversine_km(g, pool):
    lat1, lon1 = np.radians(g[0]), np.radians(g[1])
    lat2, lon2 = np.radians(pool[:, 0]), np.radians(pool[:, 1])
    dlat, dlon = lat2 - lat1, lon2 - lon1
    h = np.sin(dlat / 2) ** 2 + np.cos(lat1) * np.cos(lat2) * np.sin(dlon / 2) ** 2
    return 2.0 * 6371.0 * np.arcsin(np.sqrt(np.clip(h, 0.0, 1.0)))


def get_negatives_np(gps_np, gps_pool_np, rng):
    # TODO(synk): reference uses geopy GD (ellipsoidal geodesic); haversine
    # great-circle distance is the host-side stand-in.
    negatives = []
    for g in gps_np:
        distances = _haversine_km(g, gps_pool_np)
        order = np.argsort(distances)
        num_far = int(len(distances) * 0.5)
        near_neighbor = order[: len(distances) - num_far]
        far_neighbor = order[len(distances) - num_far:]
        if rng.rand() < 0.5:   # 'hard_negative' strategy
            selected_index = rng.choice(far_neighbor)
        else:
            selected_index = rng.choice(near_neighbor)
        negatives.append(gps_pool_np[selected_index])
    return np.stack(negatives).astype(np.float32)


def _pad_rows(a, rows):
    pad = rows - a.shape[0]
    if pad <= 0:
        return a
    return jnp.pad(a, ((0, pad),) + ((0, 0),) * (a.ndim - 1))


def triplet_loss_forward(params, imgs, gps, batch_size, gps_gallery, np_rng):
    B = imgs.shape[0]
    B_pad = ((B + 7) // 8) * 8            # fill the f32 (8,128) sublane tile

    # --- host-side negative mining first so the single device kernel is not
    #     interleaved with host syncs ---
    gps_np = np.asarray(gps)
    gps_gallery_np = np.asarray(gps_gallery)
    pool_idx = np_rng.choice(gps_gallery_np.shape[0], batch_size * 4, replace=False)
    gps_pool_np = gps_gallery_np[pool_idx]
    negatives_np = get_negatives_np(gps_np, gps_pool_np, np_rng)

    # --- pre-split lat/lon columns (no in-kernel lane selects), pad batch ---
    gps_f = jnp.asarray(gps_np, dtype=jnp.float32)
    neg_f = jnp.asarray(negatives_np, dtype=jnp.float32)
    plat = _pad_rows(gps_f[:, 0:1], B_pad)
    plon = _pad_rows(gps_f[:, 1:2], B_pad)
    nlat = _pad_rows(neg_f[:, 0:1], B_pad)
    nlon = _pad_rows(neg_f[:, 1:2], B_pad)

    # --- bf16 MXU operands; padded zero rows are masked out in the kernel ---
    x_flat = _pad_rows(imgs.reshape(B, -1), B_pad).astype(jnp.bfloat16)
    img_w = params["img_w"].astype(jnp.bfloat16)

    # --- one fused Pallas kernel: both encoders + normalize + triplet loss ---
    # TODO(synk): on v7x at real scale, add a "parallel" batch grid axis so
    # both TensorCores are used; pointless at B_pad=8.
    return pallas_triplet_loss(
        x_flat, img_w, params["img_b"],
        plat, plon, nlat, nlon,
        params["loc_w"], params["loc_b"],
        valid_b=B,
    )


# ----------------------------------------------------------------------------
# main
# ----------------------------------------------------------------------------
if __name__ == "__main__":
    B, C, H, W = 4, 3, 16, 16          # small image batch
    D = 128                            # embedding dim (lane-aligned)
    POOL = 64                          # gps gallery size

    key = jax.random.PRNGKey(0)
    k_img, k_gps, k_gal, k_w1, k_w2 = jax.random.split(key, 5)

    imgs = jax.random.normal(k_img, (B, C, H, W), dtype=jnp.float32)
    # gps = (lat, lon) in degrees
    gps = jnp.stack(
        [
            jax.random.uniform(k_gps, (B,), minval=-90.0, maxval=90.0),
            jax.random.uniform(jax.random.fold_in(k_gps, 1), (B,), minval=-180.0, maxval=180.0),
        ],
        axis=1,
    ).astype(jnp.float32)
    gps_gallery = jnp.stack(
        [
            jax.random.uniform(k_gal, (POOL,), minval=-90.0, maxval=90.0),
            jax.random.uniform(jax.random.fold_in(k_gal, 1), (POOL,), minval=-180.0, maxval=180.0),
        ],
        axis=1,
    ).astype(jnp.float32)

    params = {
        "img_w": (jax.random.normal(k_w1, (C * H * W, D), dtype=jnp.float32)
                  / np.sqrt(C * H * W)).astype(jnp.float32),
        "img_b": jnp.zeros((1, D), dtype=jnp.float32),
        "loc_w": (jax.random.normal(k_w2, (2, D), dtype=jnp.float32)
                  / np.sqrt(2.0)).astype(jnp.float32),
        "loc_b": jnp.zeros((1, D), dtype=jnp.float32),
    }

    np_rng = np.random.RandomState(0)
    loss = triplet_loss_forward(params, imgs, gps, batch_size=B,
                                gps_gallery=gps_gallery, np_rng=np_rng)
    loss = jax.block_until_ready(loss)
    assert np.isfinite(np.asarray(loss)), "loss is not finite"
    print("KERNEL_OK")
</pallas_src>

<mosaic_0001>
module attributes {stable_mosaic.version = 11 : i64} {
  func.func @_fused_triplet_kernel(%arg0: memref<8x768xbf16, #tpu.memory_space<vmem>>, %arg1: memref<768x128xbf16, #tpu.memory_space<vmem>>, %arg2: memref<1x128xf32, #tpu.memory_space<vmem>>, %arg3: memref<8x1xf32, #tpu.memory_space<vmem>>, %arg4: memref<8x1xf32, #tpu.memory_space<vmem>>, %arg5: memref<8x1xf32, #tpu.memory_space<vmem>>, %arg6: memref<8x1xf32, #tpu.memory_space<vmem>>, %arg7: memref<2x128xf32, #tpu.memory_space<vmem>>, %arg8: memref<1x128xf32, #tpu.memory_space<vmem>>, %arg9: memref<1x1xf32, #tpu.memory_space<vmem>>) attributes {dimension_semantics = [], scalar_prefetch = 0 : i64, scratch_operands = 0 : i64, tpu.core_type = #tpu.core_type<tc>} {
    %c0 = arith.constant 0 : index
    %c0_0 = arith.constant 0 : index
    %0 = vector.load %arg0[%c0, %c0_0] : memref<8x768xbf16, #tpu.memory_space<vmem>>, vector<8x768xbf16>
    %c0_1 = arith.constant 0 : index
    %c0_2 = arith.constant 0 : index
    %1 = vector.load %arg1[%c0_1, %c0_2] : memref<768x128xbf16, #tpu.memory_space<vmem>>, vector<768x128xbf16>
    %cst = arith.constant dense<0.000000e+00> : vector<8x128xf32>
    %2 = tpu.matmul %0, %1, %cst {dimension_numbers = #tpu.dot_dimension_numbers<[1], [0], [0], [1], [0, 0, 1, 1], [], []>} : vector<8x768xbf16>, vector<768x128xbf16>, vector<8x128xf32> -> vector<8x128xf32>
    %c0_3 = arith.constant 0 : index
    %c0_4 = arith.constant 0 : index
    %3 = vector.load %arg2[%c0_3, %c0_4] : memref<1x128xf32, #tpu.memory_space<vmem>>, vector<1x128xf32>
    %4 = vector.broadcast %3 : vector<1x128xf32> to vector<8x128xf32>
    %5 = arith.addf %2, %4 : vector<8x128xf32>
    %c0_5 = arith.constant 0 : index
    %c0_6 = arith.constant 0 : index
    %6 = vector.load %arg7[%c0_5, %c0_6] : memref<2x128xf32, #tpu.memory_space<vmem>>, vector<2x128xf32>
    %7 = vector.extract_strided_slice %6 {offsets = [0, 0], sizes = [1, 128], strides = [1, 1]} : vector<2x128xf32> to vector<1x128xf32>
    %8 = vector.extract_strided_slice %6 {offsets = [1, 0], sizes = [1, 128], strides = [1, 1]} : vector<2x128xf32> to vector<1x128xf32>
    %c0_7 = arith.constant 0 : index
    %c0_8 = arith.constant 0 : index
    %9 = vector.load %arg8[%c0_7, %c0_8] : memref<1x128xf32, #tpu.memory_space<vmem>>, vector<1x128xf32>
    %c0_9 = arith.constant 0 : index
    %c0_10 = arith.constant 0 : index
    %10 = vector.load %arg3[%c0_9, %c0_10] : memref<8x1xf32, #tpu.memory_space<vmem>>, vector<8x1xf32>
    %11 = vector.broadcast %10 : vector<8x1xf32> to vector<8x128xf32>
    %12 = vector.broadcast %7 : vector<1x128xf32> to vector<8x128xf32>
    %13 = arith.mulf %11, %12 : vector<8x128xf32>
    %c0_11 = arith.constant 0 : index
    %c0_12 = arith.constant 0 : index
    %14 = vector.load %arg4[%c0_11, %c0_12] : memref<8x1xf32, #tpu.memory_space<vmem>>, vector<8x1xf32>
    %15 = vector.broadcast %14 : vector<8x1xf32> to vector<8x128xf32>
    %16 = vector.broadcast %8 : vector<1x128xf32> to vector<8x128xf32>
    %17 = arith.mulf %15, %16 : vector<8x128xf32>
    %18 = arith.addf %13, %17 : vector<8x128xf32>
    %19 = vector.broadcast %9 : vector<1x128xf32> to vector<8x128xf32>
    %20 = arith.addf %18, %19 : vector<8x128xf32>
    %c0_13 = arith.constant 0 : index
    %c0_14 = arith.constant 0 : index
    %21 = vector.load %arg5[%c0_13, %c0_14] : memref<8x1xf32, #tpu.memory_space<vmem>>, vector<8x1xf32>
    %22 = vector.broadcast %21 : vector<8x1xf32> to vector<8x128xf32>
    %23 = vector.broadcast %7 : vector<1x128xf32> to vector<8x128xf32>
    %24 = arith.mulf %22, %23 : vector<8x128xf32>
    %c0_15 = arith.constant 0 : index
    %c0_16 = arith.constant 0 : index
    %25 = vector.load %arg6[%c0_15, %c0_16] : memref<8x1xf32, #tpu.memory_space<vmem>>, vector<8x1xf32>
    %26 = vector.broadcast %25 : vector<8x1xf32> to vector<8x128xf32>
    %27 = vector.broadcast %8 : vector<1x128xf32> to vector<8x128xf32>
    %28 = arith.mulf %26, %27 : vector<8x128xf32>
    %29 = arith.addf %24, %28 : vector<8x128xf32>
    %30 = vector.broadcast %9 : vector<1x128xf32> to vector<8x128xf32>
    %31 = arith.addf %29, %30 : vector<8x128xf32>
    %32 = arith.mulf %5, %5 : vector<8x128xf32>
    %cst_17 = arith.constant dense<0.000000e+00> : vector<8xf32>
    %33 = vector.multi_reduction <add>, %32, %cst_17 [1] : vector<8x128xf32> to vector<8xf32>
    %34 = vector.shape_cast %33 : vector<8xf32> to vector<8x1xf32>
    %cst_18 = arith.constant 1.000000e-24 : f32
    %35 = vector.broadcast %cst_18 : f32 to vector<8x1xf32>
    %36 = arith.maximumf %34, %35 : vector<8x1xf32>
    %37 = math.rsqrt %36 : vector<8x1xf32>
    %38 = vector.broadcast %37 : vector<8x1xf32> to vector<8x128xf32>
    %39 = arith.mulf %5, %38 : vector<8x128xf32>
    %40 = arith.mulf %20, %20 : vector<8x128xf32>
    %cst_19 = arith.constant dense<0.000000e+00> : vector<8xf32>
    %41 = vector.multi_reduction <add>, %40, %cst_19 [1] : vector<8x128xf32> to vector<8xf32>
    %42 = vector.shape_cast %41 : vector<8xf32> to vector<8x1xf32>
    %cst_20 = arith.constant 1.000000e-24 : f32
    %43 = vector.broadcast %cst_20 : f32 to vector<8x1xf32>
    %44 = arith.maximumf %42, %43 : vector<8x1xf32>
    %45 = math.rsqrt %44 : vector<8x1xf32>
    %46 = vector.broadcast %45 : vector<8x1xf32> to vector<8x128xf32>
    %47 = arith.mulf %20, %46 : vector<8x128xf32>
    %48 = arith.mulf %31, %31 : vector<8x128xf32>
    %cst_21 = arith.constant dense<0.000000e+00> : vector<8xf32>
    %49 = vector.multi_reduction <add>, %48, %cst_21 [1] : vector<8x128xf32> to vector<8xf32>
    %50 = vector.shape_cast %49 : vector<8xf32> to vector<8x1xf32>
    %cst_22 = arith.constant 1.000000e-24 : f32
    %51 = vector.broadcast %cst_22 : f32 to vector<8x1xf32>
    %52 = arith.maximumf %50, %51 : vector<8x1xf32>
    %53 = math.rsqrt %52 : vector<8x1xf32>
    %54 = vector.broadcast %53 : vector<8x1xf32> to vector<8x128xf32>
    %55 = arith.mulf %31, %54 : vector<8x128xf32>
    %56 = arith.mulf %39, %47 : vector<8x128xf32>
    %cst_23 = arith.constant dense<0.000000e+00> : vector<8xf32>
    %57 = vector.multi_reduction <add>, %56, %cst_23 [1] : vector<8x128xf32> to vector<8xf32>
    %58 = vector.shape_cast %57 : vector<8xf32> to vector<8x1xf32>
    %59 = arith.mulf %39, %55 : vector<8x128xf32>
    %cst_24 = arith.constant dense<0.000000e+00> : vector<8xf32>
    %60 = vector.multi_reduction <add>, %59, %cst_24 [1] : vector<8x128xf32> to vector<8xf32>
    %61 = vector.shape_cast %60 : vector<8xf32> to vector<8x1xf32>
    %62 = arith.subf %61, %58 : vector<8x1xf32>
    %cst_25 = arith.constant 1.000000e+00 : f32
    %63 = vector.broadcast %cst_25 : f32 to vector<8x1xf32>
    %64 = arith.addf %62, %63 : vector<8x1xf32>
    %cst_26 = arith.constant 0.000000e+00 : f32
    %65 = vector.broadcast %cst_26 : f32 to vector<8x1xf32>
    %66 = arith.maximumf %64, %65 : vector<8x1xf32>
    %67 = tpu.iota {dimensions = array<i32: 0>} : vector<8x1xi32>
    %c4_i32 = arith.constant 4 : i32
    %68 = vector.broadcast %c4_i32 : i32 to vector<8x1xi32>
    %69 = arith.cmpi slt, %67, %68 : vector<8x1xi32>
    %cst_27 = arith.constant 0.000000e+00 : f32
    %70 = vector.broadcast %cst_27 : f32 to vector<8x1xf32>
    %71 = arith.select %69, %66, %70 : vector<8x1xi1>, vector<8x1xf32>
    %72 = vector.shape_cast %71 : vector<8x1xf32> to vector<1x8x1xf32>
    %cst_28 = arith.constant dense<0.000000e+00> : vector<1xf32>
    %73 = vector.multi_reduction <add>, %72, %cst_28 [1, 2] : vector<1x8x1xf32> to vector<1xf32>
    %74 = vector.shape_cast %73 : vector<1xf32> to vector<1x1x1xf32>
    %75 = vector.extract %74[0, 0, 0] : f32 from vector<1x1x1xf32>
    %76 = vector.broadcast %75 : f32 to vector<1x1xf32>
    %cst_29 = arith.constant 4.000000e+00 : f32
    %77 = vector.broadcast %cst_29 : f32 to vector<1x1xf32>
    %78 = arith.divf %76, %77 : vector<1x1xf32>
    %c0_30 = arith.constant 0 : index
    %c0_31 = arith.constant 0 : index
    %79 = vector.load %arg9[%c0_30, %c0_31] : memref<1x1xf32, #tpu.memory_space<vmem>>, vector<1x1xf32>
    tpu.vector_store %arg9[%c0_30, %c0_31], %78 {strides = array<i32>} : memref<1x1xf32, #tpu.memory_space<vmem>>, vector<1x1xf32>,
    return
  }
}

</mosaic_0001>

<bundles_post_ra>
// kernel: tpu_custom_call.1
= control target key start
LH: loop header
LB: loop body
LE: loop exit
PB: predicated region body
PF: predicated region fallthrough
CT: control target
= control target key end

     0   :  { %14 = vsyncpa [#allocation3], 0  ;;  %s1089_s0 = inlined_call_operand.vmem [shape: bf16[8,768], index: 0, kind: input, shape index: {}]   ;;  %s1090_s1 = inlined_call_operand.hbm [shape: bf16[768,128], index: 1, kind: input, shape index: {}]   ;;  %s1091_s2 = inlined_call_operand.vmem [shape: f32[1,128], index: 2, kind: input, shape index: {}]   ;;  %s1092_s3 = inlined_call_operand.vmem [shape: f32[8,1], index: 3, kind: input, shape index: {}]   ;;  %s1093_s4 = inlined_call_operand.vmem [shape: f32[8,1], index: 4, kind: input, shape index: {}]   ;;  %s1094_s5 = inlined_call_operand.vmem [shape: f32[8,1], index: 5, kind: input, shape index: {}]   ;;  %s1095_s6 = inlined_call_operand.vmem [shape: f32[8,1], index: 6, kind: input, shape index: {}]   ;;  %s1096_s7 = inlined_call_operand.vmem [shape: f32[2,128], index: 7, kind: input, shape index: {}]   ;;  %s1097_s8 = inlined_call_operand.vmem [shape: f32[1,128], index: 8, kind: input, shape index: {}]   ;;  %s1098_s9 = inlined_call_operand.hbm [shape: f32[1,1], index: 9, kind: output, shape index: {}]  }
   0x1   :  { %15 = vsyncpa [#allocation4], 0  ;;  %s22_s11 = sshll.u32 %s1090_s1, 4  ;;  %s987_s12 = smov [#allocation2]   ;;  %s23_s11 = int_to_ptr.hbm [resolvable:$true] %s22_s11 }
   0x2   :  { %s24_s13 = sshll.u32 %s987_s12, 4  ;;  %s988_s14 = smov 64   ;;  %s25_s13 = int_to_ptr.vmem [resolvable:$true] %s24_s13 }
   0x3   :  { %s989_s15 = smov 4  }
   0x4   :  { %30 = dma.hbm_to_vmem [thread:$0]  %s23_s11, 6144, %s25_s13, [#allocation3], %s988_s14, %s988_s14, %s989_s15  }
   0x5   :  { %983 = dma.done.wait [#allocation3], 6144  }
   0x6   :  { %984 = vsyncadd [#allocation3], 4294961152  ;;  %v990_v0 = vmov 0   ;;  %v562_v1 = vld [vmem:[%s1094_s5] sm:$0xff]  ;;  %v874_v2 = vld [vmem:[#allocation2 + $0x38] sm:$0xff]  ;;  %vm636_vm10 = vcmask 7168  }
   0x7   :  { %924 = vset.pattern.permute.xlu1 %v990_v0  ;;  %923 = vset.pattern.permute.xlu0 %v990_v0  ;;  %v882_v3 = vld [vmem:[#allocation2 + $0x78] sm:$0xff]  ;;  %v873_v4 = vld [vmem:[#allocation2 + $0x30] sm:$0xff]  ;;  %v569_v10 = vld [vmem:[%s1095_s6] sm:$0xff]  ;;  %s665_s10 = sshll.u32 %s1098_s9, 4  ;;  %vm656_vm12 = vcmask 0   ;;  %s666_s10 = int_to_ptr.hbm [resolvable:$true] %s665_s10 }
   0x8   :  { %565 = vperm.xlu1 %924, %v562_v1   ;;  %461 = vmatpush.bf16.msra.mxu0 %v874_v2  ;;  %v881_v5 = vld [vmem:[#allocation2 + $0x70] sm:$0xff]  ;;  %v890_v6 = vld [vmem:[#allocation2 + $0xb8] sm:$0xff]  ;;  %v872_v11 = vld [vmem:[#allocation2 + $0x28] sm:$0xff] }
   0x9   :  { %474 = vmatpush.bf16.msra.mxu1 %v882_v3  ;;  %v898_v7 = vld [vmem:[#allocation2 + $0xf8] sm:$0xff]  ;;  %487 = vmatpush.bf16.msra.mxu2 %v890_v6  ;;  %v889_v8 = vld [vmem:[#allocation2 + $0xb0] sm:$0xff]  ;;  %v880_v12 = vld [vmem:[#allocation2 + $0x68] sm:$0xff] }
   0xa   :  { %500 = vmatpush.bf16.msra.mxu3 %v898_v7  ;;  %v897_v9 = vld [vmem:[#allocation2 + $0xf0] sm:$0xff]  ;;  %v888_v13 = vld [vmem:[#allocation2 + $0xa8] sm:$0xff]  ;;  %v871_v15 = vld [vmem:[#allocation2 + $0x20] sm:$0xff] }
   0xb   :  { %v896_v14 = vld [vmem:[#allocation2 + $0xe8] sm:$0xff]  ;;  %v879_v16 = vld [vmem:[#allocation2 + $0x60] sm:$0xff]  ;;  %v870_v19 = vld [vmem:[#allocation2 + $0x18] sm:$0xff] }
   0xc   :  { %462 = vmatpush.bf16.msra.mxu0 %v873_v4  ;;  %v887_v17 = vld [vmem:[#allocation2 + $0xa0] sm:$0xff]  ;;  %v878_v20 = vld [vmem:[#allocation2 + $0x58] sm:$0xff]  ;;  %v869_v23 = vld [vmem:[#allocation2 + $0x10] sm:$0xff] }
   0xd   :  { %475 = vmatpush.bf16.msra.mxu1 %v881_v5  ;;  %488 = vmatpush.bf16.msra.mxu2 %v889_v8  ;;  %v895_v18 = vld [vmem:[#allocation2 + $0xe0] sm:$0xff]  ;;  %v886_v21 = vld [vmem:[#allocation2 + $0x98] sm:$0xff]  ;;  %v877_v24 = vld [vmem:[#allocation2 + $0x50] sm:$0xff] }
   0xe   :  { %501 = vmatpush.bf16.msra.mxu3 %v897_v9  ;;  %v894_v22 = vld [vmem:[#allocation2 + $0xd8] sm:$0xff]  ;;  %v885_v25 = vld [vmem:[#allocation2 + $0x90] sm:$0xff]  ;;  %v868_v27 = vld [vmem:[#allocation2 + $0x8] sm:$0xff] }
   0xf   :  { %v893_v26 = vld [vmem:[#allocation2 + $0xd0] sm:$0xff]  ;;  %v876_v28 = vld [vmem:[#allocation2 + $0x48] sm:$0xff]  ;;  %v49_v29 = vld [vmem:[%s1089_s0] sm:$0xff] }
  0x10   :  { %572 = vperm.xlu1 %924, %v569_v10   ;;  %463 = vmatpush.bf16.msra.mxu0 %v872_v11  ;;  %v884_v30 = vld [vmem:[#allocation2 + $0x88] sm:$0xff]  ;;  %v155_v31 = vunpack.c.l.b16 %v49_v29  ;;  %v156_v33 = vunpack.c.h.b16 %v49_v29  ;;  %v867_v35 = vld [vmem:[#allocation2] sm:$0xff]  ;;  %v906_v37 = vld [vmem:[#allocation2 + $0x138] sm:$0xff] }
  0x11   :  { %476 = vmatpush.bf16.msra.mxu1 %v880_v12  ;;  %489 = vmatpush.bf16.msra.mxu2 %v888_v13  ;;  %v892_v32 = vld [vmem:[#allocation2 + $0xc8] sm:$0xff]  ;;  %v875_v36 = vld [vmem:[#allocation2 + $0x40] sm:$0xff]  ;;  %v914_v38 = vld [vmem:[#allocation2 + $0x178] sm:$0xff] }
  0x12   :  { %502 = vmatpush.bf16.msra.mxu3 %v896_v14  ;;  %v50_v34 = vld [vmem:[%s1089_s0 + $0x8] sm:$0xff]  ;;  %v883_v39 = vld [vmem:[#allocation2 + $0x80] sm:$0xff]  ;;  %v161_v41 = vpack.c.b16 %v155_v31, %v155_v31  ;;  %v162_v42 = vpack.c.b16 %v156_v33, %v156_v33  ;;  %v905_v46 = vld [vmem:[#allocation2 + $0x130] sm:$0xff] }
  0x13   :  { %v157_v40 = vunpack.c.l.b16 %v50_v34  ;;  %v158_v43 = vunpack.c.h.b16 %v50_v34  ;;  %v891_v44 = vld [vmem:[#allocation2 + $0xc0] sm:$0xff]  ;;  %v913_v47 = vld [vmem:[#allocation2 + $0x170] sm:$0xff]  ;;  %v904_v50 = vld [vmem:[#allocation2 + $0x128] sm:$0xff] }
  0x14   :  { %464 = vmatpush.bf16.msra.mxu0 %v871_v15  ;;  %v541_v45 = vld [vmem:[%s1092_s3] sm:$0xff]  ;;  %v912_v51 = vld [vmem:[#allocation2 + $0x168] sm:$0xff]  ;;  %v902_v55 = vld [vmem:[#allocation2 + $0x118] sm:$0xff] }
  0x15   :  { %477 = vmatpush.bf16.msra.mxu1 %v879_v16  ;;  %490 = vmatpush.bf16.msra.mxu2 %v887_v17  ;;  %v163_v48 = vpack.c.b16 %v157_v40, %v157_v40  ;;  %v164_v49 = vpack.c.b16 %v158_v43, %v158_v43  ;;  %v549_v52 = vld [vmem:[%s1093_s4] sm:$0xff]  ;;  %v910_v56 = vld [vmem:[#allocation2 + $0x158] sm:$0xff]  ;;  %v901_v57 = vld [vmem:[#allocation2 + $0x110] sm:$0xff] }
  0x16   :  { %503 = vmatpush.bf16.msra.mxu3 %v895_v18  ;;  %544 = vperm.xlu0 %923, %v541_v45   ;;  %v903_v53 = vld [vmem:[#allocation2 + $0x120] sm:$0xff]  ;;  %v909_v58 = vld [vmem:[#allocation2 + $0x150] sm:$0xff]  ;;  %v900_v59 = vld [vmem:[#allocation2 + $0x108] sm:$0xff] }
  0x17   :  { %v911_v54 = vld [vmem:[#allocation2 + $0x160] sm:$0xff]  ;;  %v908_v60 = vld [vmem:[#allocation2 + $0x148] sm:$0xff]  ;;  %v51_v61 = vld [vmem:[%s1089_s0 + $0x10] sm:$0xff] }
  0x18   :  { %465 = vmatpush.bf16.msra.mxu0 %v870_v19  ;;  %v159_v62 = vunpack.c.l.b16 %v51_v61  ;;  %v160_v63 = vunpack.c.h.b16 %v51_v61  ;;  %v899_v0 = vld [vmem:[#allocation2 + $0x100] sm:$0xff] }
  0x19   :  { %478 = vmatpush.bf16.msra.mxu1 %v878_v20  ;;  %491 = vmatpush.bf16.msra.mxu2 %v886_v21  ;;  %v907_v1 = vld [vmem:[#allocation2 + $0x140] sm:$0xff] }
  0x1a   :  { %504 = vmatpush.bf16.msra.mxu3 %v894_v22  ;;  %v165_v2 = vpack.c.b16 %v159_v62, %v159_v62  ;;  %v166_v3 = vpack.c.b16 %v160_v63, %v160_v63  ;;  %v539_v5 = vld [vmem:[%s1096_s7] sm:$0x3] }
  0x1b   :  { %v547_v6 = vperm.slane %v539_v5, 0  ;;  %v555_v7 = vperm.slane %v539_v5, 1  ;;  %v925_v11 = vld [vmem:[%s1097_s8] ss:$0 sm:$0xff] }
  0x1c   :  { %466 = vmatpush.bf16.msra.mxu0 %v869_v23 }
  0x1d   :  { %479 = vmatpush.bf16.msra.mxu1 %v877_v24  ;;  %492 = vmatpush.bf16.msra.mxu2 %v885_v25 }
  0x1e   :  { %505 = vmatpush.bf16.msra.mxu3 %v893_v26  ;;  %552 = vperm.xlu0 %923, %v549_v52  }
  0x20   :  { %467 = vmatpush.bf16.msra.mxu0 %v868_v27  ;;  %v926_v27 = vld [vmem:[%s1091_s2] ss:$0 sm:$0xff]  ;;  %s992_s2 = smov [#allocation5]  }
  0x21   :  { %480 = vmatpush.bf16.msra.mxu1 %v876_v28  ;;  %493 = vmatpush.bf16.msra.mxu2 %v884_v30  ;;  %s663_s28 = sshll.u32 %s992_s2, 4  ;;  %s664_s28 = int_to_ptr.vmem [resolvable:$true] %s663_s28 }
  0x22   :  { %506 = vmatpush.bf16.msra.mxu3 %v892_v32 }
  0x24   :  { %468 = vmatpush.bf16.msra.mxu0 %v867_v35 }
  0x25   :  { %481 = vmatpush.bf16.msra.mxu1 %v875_v36  ;;  %494 = vmatpush.bf16.msra.mxu2 %v883_v39 }
  0x26   :  { %507 = vmatpush.bf16.msra.mxu3 %v891_v44 }
  0x27   :  { %469 = vmatmul.bf16.vlgmr.msra.gmra.mxu0 %v161_v41 }
  0x28   :  { %513 = vmatpush.bf16.msrb.mxu0 %v906_v37  ;;  %482 = vmatmul.bf16.vlgmr.msra.gmra.mxu1 %v162_v42 }
  0x29   :  { %526 = vmatpush.bf16.msrb.mxu1 %v914_v38  ;;  %495 = vmatmul.bf16.vlgmr.msra.gmra.mxu2 %v163_v48 }
  0x2a   :  { %508 = vmatmul.bf16.vlgmr.msra.gmra.mxu3 %v164_v49 }
  0x2c   :  { %514 = vmatpush.bf16.msrb.mxu0 %v905_v46 }
  0x2d   :  { %527 = vmatpush.bf16.msrb.mxu1 %v913_v47 }
  0x30   :  { %515 = vmatpush.bf16.msrb.mxu0 %v904_v50 }
  0x31   :  { %528 = vmatpush.bf16.msrb.mxu1 %v912_v51 }
  0x34   :  { %516 = vmatpush.bf16.msrb.mxu0 %v903_v53 }
  0x35   :  { %529 = vmatpush.bf16.msrb.mxu1 %v911_v54 }
  0x38   :  { %517 = vmatpush.bf16.msrb.mxu0 %v902_v55 }
  0x39   :  { %530 = vmatpush.bf16.msrb.mxu1 %v910_v56 }
  0x3c   :  { %518 = vmatpush.bf16.msrb.mxu0 %v901_v57 }
  0x3d   :  { %531 = vmatpush.bf16.msrb.mxu1 %v909_v58 }
  0x40   :  { %519 = vmatpush.bf16.msrb.mxu0 %v900_v59 }
  0x41   :  { %532 = vmatpush.bf16.msrb.mxu1 %v908_v60 }
  0x44   :  { %520 = vmatpush.bf16.msrb.mxu0 %v899_v0 }
  0x45   :  { %533 = vmatpush.bf16.msrb.mxu1 %v907_v1 }
  0x47   :  { %521 = vmatmul.bf16.vlgmr.msrb.gmra.mxu0 %v165_v2 }
  0x48   :  { %534 = vmatmul.bf16.vlgmr.msrb.gmra.mxu1 %v166_v3 }
  0x7a   :  { %v566_v4 = vpop.permute.xlu1 %565 }
  0x7b   :  { %v568_v8 = vmul.f32 %v566_v4, %v547_v6 }
  0x82   :  { %v573_v9 = vpop.permute.xlu1 %572 }
  0x83   :  { %v575_v10 = vmul.f32 %v573_v9, %v555_v7 }
  0x85   :  { %v576_v12 = vadd.f32 %v575_v10, %v568_v8  ;;  %v632_v10 = vlaneseq }
  0x87   :  { %v1073_v13 = vadd.f32 %v925_v11, %v576_v12 }
  0x88   :  { %v545_v15 = vpop.permute.xlu0 %544 }
  0x89   :  { %v608_v14 = vmul.f32 %v1073_v13, %v1073_v13  ;;  %v548_v16 = vmul.f32 %v547_v6, %v545_v15 }
  0x8b   :  { %609 = vadd.xlane.f32.xlu0 %v608_v14  ;;  %v633_v14 = vshrl.u32 %v632_v10, 7 }
  0x8d   :  { %vm634_vm9 = vcmp.lt.s32.totalorder %v633_v14, 4 }
  0x90   :  { %v553_v17 = vpop.permute.xlu0 %552 }
  0x91   :  { %v556_v18 = vmul.f32 %v555_v7, %v553_v17 }
  0x93   :  { %v557_v19 = vadd.f32 %v556_v18, %v548_v16 }
  0x95   :  { %v1077_v22 = vadd.f32 %v925_v11, %v557_v19 }
  0x97   :  { %v593_v41 = vmul.f32 %v1077_v22, %v1077_v22 }
  0xa4   :  { %v470_v20 = vpop.f32.mrf.mxu0 }
  0xa5   :  { %v483_v21 = vpop.f32.mrf.mxu1  ;;  %v471_v28 = vadd.f32 %v926_v27, %v470_v20 }
  0xa7   :  { %v484_v31 = vadd.f32 %v483_v21, %v471_v28 }
  0xac   :  { %v472_v23 = vpop.f32.mrf.mxu0  ;;  %v496_v25 = vpop.f32.mrf.mxu2 }
  0xad   :  { %v485_v24 = vpop.f32.mrf.mxu1  ;;  %v509_v26 = vpop.f32.mrf.mxu3  ;;  %v497_v32 = vadd.f32 %v496_v25, %v484_v31 }
  0xaf   :  { %v510_v33 = vadd.f32 %v509_v26, %v497_v32  ;;  %v991_v26 = vmov 4.0  }
  0xb4   :  { %v498_v29 = vpop.f32.mrf.mxu2 }
  0xb5   :  { %v511_v30 = vpop.f32.mrf.mxu3 }
  0xc4   :  { %v522_v34 = vpop.f32.mrf.mxu0 }
  0xc5   :  { %v535_v35 = vpop.f32.mrf.mxu1  ;;  %v523_v36 = vadd.f32 %v522_v34, %v510_v33 }
  0xc7   :  { %v536_v37 = vadd.f32 %v535_v35, %v523_v36 }
  0xc9   :  { %v578_v38 = vmul.f32 %v536_v37, %v536_v37 }
  0xcb   :  { %579 = vadd.xlane.f32.xlu2 %v578_v38 }
  0xcc   :  { %v524_v39 = vpop.f32.mrf.mxu0 }
  0xcd   :  { %v537_v40 = vpop.f32.mrf.mxu1 }
  0xd3   :  { %594 = vadd.xlane.f32.xlu2 %v593_v41 }
  0xfe   :  { %v610_v42 = vpop.xlane.xlu0 %609 }
  0xff   :  { %v611_v43 = vmax.f32 %v610_v42, 1e-24 }
 0x101   :  { %927 = vrsqrt.f32 %v611_v43  ;;  %vm618_vm0 = vweird.f32 %v611_v43 }
 0x107   :  { %v928_v44 = vpop.eup %927 }
 0x108   :  { %v613_v45 = vmul.f32 %v928_v44, %v611_v43  ;;  %vm619_vm1 = vweird.f32 %v928_v44 }
 0x109   :  { %vm620_vm2 = vmor %vm618_vm0, %vm619_vm1 }
 0x10a   :  { %v614_v48 = vmul.f32 %v928_v44, %v613_v45 }
 0x10c   :  { %v615_v49 = vmul.f32 0.5, %v614_v48 }
 0x10e   :  { %v616_v53 = vsub.f32 1.5, %v615_v49 }
 0x110   :  { %v617_v57 = vmul.f32 %v928_v44, %v616_v53 }
 0x112   :  { %v621_v62 = vsel %vm620_vm2, %v928_v44, %v617_v57 }
 0x113   :  { %v622_v2 = vmul.f32 %v621_v62, %v1073_v13 }
 0x13e   :  { %v580_v46 = vpop.xlane.xlu2 %579 }
 0x13f   :  { %v581_v47 = vmax.f32 %v580_v46, 1e-24 }
 0x141   :  { %929 = vrsqrt.f32 %v581_v47  ;;  %vm588_vm4 = vweird.f32 %v581_v47 }
 0x146   :  { %v595_v50 = vpop.xlane.xlu2 %594 }
 0x147   :  { %v930_v51 = vpop.eup %929  ;;  %v596_v52 = vmax.f32 %v595_v50, 1e-24 }
 0x148   :  { %v583_v54 = vmul.f32 %v930_v51, %v581_v47  ;;  %vm589_vm3 = vweird.f32 %v930_v51 }
 0x149   :  { %931 = vrsqrt.f32 %v596_v52  ;;  %vm590_vm5 = vmor %vm588_vm4, %vm589_vm3  ;;  %vm603_vm7 = vweird.f32 %v596_v52 }
 0x14a   :  { %v584_v55 = vmul.f32 %v930_v51, %v583_v54  ;;  %933 = vrcp.f32 %v991_v26 }
 0x14c   :  { %v585_v56 = vmul.f32 0.5, %v584_v55 }
 0x14e   :  { %v586_v58 = vsub.f32 1.5, %v585_v56 }
 0x14f   :  { %v932_v59 = vpop.eup %931 }
 0x150   :  { %v598_v60 = vmul.f32 %v932_v59, %v596_v52  ;;  %v587_v61 = vmul.f32 %v930_v51, %v586_v58  ;;  %vm604_vm6 = vweird.f32 %v932_v59  ;;  %v934_v27 = vpop.eup %933 }
 0x151   :  { %vm605_vm8 = vmor %vm603_vm7, %vm604_vm6  ;;  %v649_v28 = vmul.f32 4.0, %v934_v27  ;;  %vm653_vm11 = vweird.f32 %v934_v27 }
 0x152   :  { %v599_v63 = vmul.f32 %v932_v59, %v598_v60  ;;  %v591_v0 = vsel %vm590_vm5, %v930_v51, %v587_v61 }
 0x153   :  { %v592_v1 = vmul.f32 %v591_v0, %v536_v37  ;;  %v650_v29 = vsub.f32 1.0, %v649_v28 }
 0x154   :  { %v600_v3 = vmul.f32 0.5, %v599_v63 }
 0x155   :  { %v626_v4 = vmul.f32 %v622_v2, %v592_v1  ;;  %v651_v30 = vmul.f32 %v934_v27, %v650_v29 }
 0x156   :  { %v601_v5 = vsub.f32 1.5, %v600_v3 }
 0x157   :  { %627 = vadd.xlane.f32.xlu2 %v626_v4  ;;  %v652_v31 = vadd.f32 %v934_v27, %v651_v30 }
 0x158   :  { %v602_v6 = vmul.f32 %v932_v59, %v601_v5 }
 0x159   :  { %v654_v32 = vsel %vm653_vm11, %v934_v27, %v652_v31 }
 0x15a   :  { %v606_v7 = vsel %vm605_vm8, %v932_v59, %v602_v6 }
 0x15b   :  { %v607_v8 = vmul.f32 %v606_v7, %v1077_v22 }
 0x15d   :  { %v623_v9 = vmul.f32 %v607_v8, %v592_v1 }
 0x15f   :  { %624 = vadd.xlane.f32.xlu1 %v623_v9 }
 0x1ca   :  { %v628_v11 = vpop.xlane.xlu2 %627 }
 0x1d2   :  { %v625_v12 = vpop.xlane.xlu1 %624 }
 0x1d3   :  { %v629_v15 = vsub.f32 %v628_v11, %v625_v12 }
 0x1d5   :  { %v630_v16 = vadd.f32 1.0, %v629_v15 }
 0x1d7   :  { %v631_v13 = vmax.f32 %v630_v16, 0.0 }
 0x1d9   :  { %v635_v17 = vsel %vm634_vm9, %v631_v13, 0.0 }
 0x1da   :  { %v637_v18 = vsel %vm636_vm10, %v635_v17, 0.0 }
 0x1db   :  { %638 = vadd.xlane.f32.xlu2 %v637_v18 }
 0x24e   :  { %v639_v19 = vpop.xlane.xlu2 %638 }
 0x24f   :  { %v640_v20 = vrot.slane %v639_v19, 4 }
 0x251   :  { %v641_v21 = vadd.f32 %v640_v20, %v639_v19 }
 0x253   :  { %v642_v23 = vrot.slane %v641_v21, 2 }
 0x255   :  { %v643_v24 = vadd.f32 %v642_v23, %v641_v21 }
 0x257   :  { %v644_v22 = vrot.slane %v643_v24, 1 }
 0x259   :  { %v645_v25 = vadd.f32 %v644_v22, %v643_v24 }
 0x25b   :  { %915 = vpush %v645_v25 }
 0x28c   :  { %s916_s11 = spop %915 }
 0x28d   :  { %v647_v33 = vstv %s916_s11 }
 0x28e   :  { %v655_v34 = vmul.f32 %v654_v32, %v647_v33 }
 0x290   :  { %657 = vst.msk [vmem:[#allocation5] sm:$0x1] %vm656_vm12, %v655_v34 }
 0x291   :  { %668 = dma.vmem_to_hbm [thread:$0]  %s664_s28, 16, %s666_s10, [#allocation4]  }
 0x292   :  { %985 = dma.done.wait [#allocation4], 16  }
 0x293   :  { %986 = vsyncadd [#allocation4], 4294967280 }
 0x294   :  { %673 = vsyncpa [#allocation3], 1 }
 0x295   :  { %674 = vsyncpa [#allocation4], 1 }

</bundles_post_ra>
